<compile_context>
chip_gen: v5e
topology: v5e:2x2
jax: 0.10.0
libtpu: 0.0.40
codegen_flags: <defaults>
</compile_context>

<pallas_src>
import functools

import jax
import jax.numpy as jnp
from jax.experimental import pallas as pl
from jax.experimental.pallas import tpu as pltpu

# (out_channels, stride) of the single ResidualBlock in each of layer1..layer4.
LAYER_CFG = ((64, 1), (128, 2), (256, 2), (512, 2))

_VMEM_LIMIT = 32 * 1024 * 1024      # worst per-call footprint is ~12 MiB
_ACC_BUDGET = 2 * 1024 * 1024       # f32 accumulator budget per row block


# ----------------------------- helpers --------------------------------------

def _round_up(x, m):
    return (x + m - 1) // m * m


def _pad_axis(x, axis, mult):
    pad = (-x.shape[axis]) % mult
    if pad == 0:
        return x
    cfg = [(0, 0)] * x.ndim
    cfg[axis] = (0, pad)
    return jnp.pad(x, cfg)


def _pick_rb(oh, owp, cout):
    """Output rows per grid step: largest divisor of OH whose f32 accumulator
    fits the budget while keeping >= 2 (even) row blocks (v7x has 2 cores)."""
    per_row = owp * cout * 4
    best = 1
    for d in range(1, oh + 1):
        if oh % d == 0 and d * per_row <= _ACC_BUDGET and oh // d >= 2:
            best = d
    return best


def _pick_tm(m):
    m8 = _round_up(m, 8)
    if m8 <= 2048:                     # raised cap (perf review): fewer steps
        return m8
    for t in (2048, 1024, 512, 256, 128):
        if m8 % t == 0:
            return t
    return 256


def _pick_tn(n):
    if n <= 256:
        return n
    for t in (256, 128):
        if n % t == 0:
            return t
    return n


# --------------------------- fused GEMM (stem + FC) --------------------------

def _gemm_kernel(a_ref, b_ref, s_ref, c_ref, o_ref, *, relu):
    """out = maybe_relu((A @ B) * scale + bias); bf16 MXU, f32 epilogue."""
    acc = jnp.dot(a_ref[...], b_ref[...], preferred_element_type=jnp.float32)
    out = acc * s_ref[...] + c_ref[...]
    if relu:
        out = jnp.maximum(out, 0.0)
    o_ref[...] = out.astype(o_ref.dtype)


def gemm_bn(a, b, scale, bias, *, relu, out_dtype=jnp.bfloat16):
    """Fused Pallas GEMM: maybe_relu((A @ B) * scale + bias)."""
    M, K = a.shape
    Kb, N = b.shape
    assert K == Kb, (K, Kb)

    a = a.astype(jnp.bfloat16)
    b = b.astype(jnp.bfloat16)

    tm = _pick_tm(M)
    tn = _pick_tn(N)

    a_p = _pad_axis(a, 0, tm)          # only the batch-1 FC rows actually pad
    Mp = a_p.shape[0]
    gm, gn = Mp // tm, N // tn

    s2 = scale.reshape(1, N).astype(jnp.float32)
    c2 = bias.reshape(1, N).astype(jnp.float32)

    # Larger parallel extent first so 2-TC chips shard evenly.
    if gn > gm:
        grid = (gn, gm)
        a_map = lambda j, i: (i, 0)
        b_map = lambda j, i: (0, j)
        v_map = lambda j, i: (0, j)
        o_map = lambda j, i: (i, j)
    else:
        grid = (gm, gn)
        a_map = lambda i, j: (i, 0)
        b_map = lambda i, j: (0, j)
        v_map = lambda i, j: (0, j)
        o_map = lambda i, j: (i, j)

    out_itemsize = jnp.dtype(out_dtype).itemsize
    cost = pl.CostEstimate(
        flops=2 * Mp * N * K,
        transcendentals=0,
        bytes_accessed=int(a_p.size * 2 + b.size * 2 + Mp * N * out_itemsize
                           + 2 * N * 4))

    out = pl.pallas_call(
        functools.partial(_gemm_kernel, relu=relu),
        out_shape=jax.ShapeDtypeStruct((Mp, N), out_dtype),
        grid_spec=pltpu.PrefetchScalarGridSpec(
            num_scalar_prefetch=0,
            grid=grid,
            in_specs=[pl.BlockSpec((tm, K), a_map),   # full-K block: no K grid
                      pl.BlockSpec((K, tn), b_map),
                      pl.BlockSpec((1, tn), v_map),
                      pl.BlockSpec((1, tn), v_map)],
            out_specs=pl.BlockSpec((tm, tn), o_map)),
        compiler_params=pltpu.CompilerParams(
            dimension_semantics=("parallel", "parallel"),
            vmem_limit_bytes=_VMEM_LIMIT),
        cost_estimate=cost,
    )(a_p, b, s2, c2)

    if Mp != M:
        out = out[:M]
    return out


# -------------------- fused 3x3 conv kernels (tap GEMMs) ---------------------

def _conv3x3_s1_kernel(x_ref, w_ref, s_ref, b_ref, *args, rb, owp, cin,
                       relu, has_res):
    """3x3 stride-1 conv + BN (+residual) (+ReLU) for one block of output rows.

    x_ref: (1, H+2, OWp+2, Cin) padded input, fully VMEM resident.
    w_ref: (9*Cin, Cout) folded weight.  Output block: (rb*OWp, Cout).
    """
    if has_res:
        r_ref, o_ref = args
    else:
        (o_ref,) = args
    r0 = pl.multiple_of(pl.program_id(1) * rb, rb)
    acc = None
    for di in range(3):
        for dj in range(3):
            a = x_ref[0, pl.ds(r0 + di, rb), pl.ds(dj, owp), :]
            a = a.reshape(rb * owp, cin)
            wt = w_ref[(di * 3 + dj) * cin:(di * 3 + dj + 1) * cin, :]
            d = jnp.dot(a, wt, preferred_element_type=jnp.float32)
            acc = d if acc is None else acc + d
    out = acc * s_ref[...] + b_ref[...]
    if has_res:
        out = out + r_ref[...].astype(jnp.float32)
    if relu:
        out = jnp.maximum(out, 0.0)
    o_ref[...] = out.astype(o_ref.dtype)


def _conv3x3_s2_ds_kernel(x_ref, w_ref, wd_ref, s_ref, b_ref, sd_ref, bd_ref,
                          h_ref, r_ref, *, rb, owp, cin):
    """3x3 stride-2 conv+BN+ReLU plus fused 1x1 stride-2 downsample conv+BN.

    x_ref holds the 4 space-to-depth phases of the zero-padded input:
    phase[p*2 + q][i, j, :] == x_pad[2*i + p, 2*j + q, :], so every tap read
    is a contiguous (unstrided) slice.
    """
    r0 = pl.multiple_of(pl.program_id(1) * rb, rb)
    acc = None
    for di in range(3):
        p, ro = di % 2, di // 2
        for dj in range(3):
            q, co = dj % 2, dj // 2
            a = x_ref[p * 2 + q, pl.ds(r0 + ro, rb), pl.ds(co, owp), :]
            a = a.reshape(rb * owp, cin)
            wt = w_ref[(di * 3 + dj) * cin:(di * 3 + dj + 1) * cin, :]
            d = jnp.dot(a, wt, preferred_element_type=jnp.float32)
            acc = d if acc is None else acc + d
    h = acc * s_ref[...] + b_ref[...]
    h_ref[...] = jnp.maximum(h, 0.0).astype(h_ref.dtype)
    # 1x1/stride-2 downsample reads x[2r, 2c] == x_pad[2r+1, 2c+1] == phase 3.
    xc = x_ref[3, pl.ds(r0, rb), pl.ds(0, owp), :].reshape(rb * owp, cin)
    res = jnp.dot(xc, wd_ref[...], preferred_element_type=jnp.float32)
    r_ref[...] = (res * sd_ref[...] + bd_ref[...]).astype(r_ref.dtype)


def conv3x3_bn(x, w, scale, bias, *, relu=True, residual=None):
    """Fused Conv2d(3x3, s1, p1, bias=False)+BN (+residual add) (+ReLU).

    x: (N, H, W, Cin) bf16.  w: (9*Cin, Cout) bf16 in (kh, kw, cin) tap order.
    residual: (N, H, W, Cout) or None.  Returns (N, H, W, Cout) bf16.
    """
    n, hh, ww, cin = x.shape
    cout = w.shape[1]
    oh, ow = hh, ww
    owp = _round_up(ow, 8)             # keep in-kernel reshape tiling-aligned
    wpad = owp - ow

    xp = jnp.pad(x.astype(jnp.bfloat16),
                 ((0, 0), (1, 1), (1, 1 + wpad), (0, 0)))
    rb = _pick_rb(oh, owp, cout)
    nrb = oh // rb
    grid = (n, nrb)

    s2 = scale.reshape(1, cout).astype(jnp.float32)
    b2 = bias.reshape(1, cout).astype(jnp.float32)

    xmap = lambda bn, r: (bn, 0, 0, 0)
    cmap = lambda bn, r: (0, 0)
    omap = lambda bn, r: (bn * nrb + r, 0)

    in_specs = [
        pl.BlockSpec((1, hh + 2, owp + 2, cin), xmap),   # whole padded image
        pl.BlockSpec((9 * cin, cout), cmap),             # whole folded weight
        pl.BlockSpec((1, cout), cmap),
        pl.BlockSpec((1, cout), cmap),
    ]
    args = [xp, w.astype(jnp.bfloat16), s2, b2]
    res_bytes = 0
    if residual is not None:
        r = residual.astype(jnp.bfloat16)
        if wpad:
            r = jnp.pad(r, ((0, 0), (0, 0), (0, wpad), (0, 0)))
        r = r.reshape(n * oh * owp, cout)
        in_specs.append(pl.BlockSpec((rb * owp, cout), omap))
        args.append(r)
        res_bytes = r.size * 2

    m_pad = n * oh * owp
    kernel = functools.partial(_conv3x3_s1_kernel, rb=rb, owp=owp, cin=cin,
                               relu=relu, has_res=residual is not None)
    cost = pl.CostEstimate(
        flops=2 * m_pad * 9 * cin * cout,
        transcendentals=0,
        bytes_accessed=int(xp.size * 2 + w.size * 2 + m_pad * cout * 2
                           + res_bytes))

    out = pl.pallas_call(
        kernel,
        out_shape=jax.ShapeDtypeStruct((m_pad, cout), jnp.bfloat16),
        grid_spec=pltpu.PrefetchScalarGridSpec(
            num_scalar_prefetch=0, grid=grid, in_specs=in_specs,
            out_specs=pl.BlockSpec((rb * owp, cout), omap)),
        compiler_params=pltpu.CompilerParams(
            dimension_semantics=("parallel", "parallel"),
            vmem_limit_bytes=_VMEM_LIMIT),
        cost_estimate=cost,
    )(*args)

    out = out.reshape(n, oh, owp, cout)
    if wpad:
        out = out[:, :, :ow, :]
    return out


def conv3x3_s2_ds_bn(x, w, scale, bias, wd, dscale, dbias):
    """Front half of a stride-2 ResidualBlock in ONE pallas_call:
    (3x3/s2 conv + BN + ReLU) and (1x1/s2 downsample conv + BN).

    x: (N, H, W, Cin) bf16.  Returns (h, res), each (N, H/2, W/2, Cout) bf16.
    """
    n, hh, ww, cin = x.shape
    cout = w.shape[1]
    assert hh % 2 == 0 and ww % 2 == 0, (hh, ww)
    oh, ow = hh // 2, ww // 2
    owp = _round_up(ow, 8)
    wpad = owp - ow

    xp = jnp.pad(x.astype(jnp.bfloat16),
                 ((0, 0), (1, 1), (1, 1 + 2 * wpad), (0, 0)))
    hp, wp = hh + 2, ww + 2 + 2 * wpad
    # space-to-depth: phase[n, p, q, i, j, :] = xp[n, 2i+p, 2j+q, :]
    xph = xp.reshape(n, hp // 2, 2, wp // 2, 2, cin)
    xph = xph.transpose(0, 2, 4, 1, 3, 5).reshape(n * 4, hp // 2, wp // 2, cin)

    rb = _pick_rb(oh, owp, cout)
    nrb = oh // rb
    grid = (n, nrb)

    s2 = scale.reshape(1, cout).astype(jnp.float32)
    b2 = bias.reshape(1, cout).astype(jnp.float32)
    ds2 = dscale.reshape(1, cout).astype(jnp.float32)
    db2 = dbias.reshape(1, cout).astype(jnp.float32)

    xmap = lambda bn, r: (bn, 0, 0, 0)
    cmap = lambda bn, r: (0, 0)
    omap = lambda bn, r: (bn * nrb + r, 0)

    m_pad = n * oh * owp
    kernel = functools.partial(_conv3x3_s2_ds_kernel, rb=rb, owp=owp, cin=cin)
    cost = pl.CostEstimate(
        flops=2 * m_pad * (9 * cin * cout + cin * cout),
        transcendentals=0,
        bytes_accessed=int(xph.size * 2 + w.size * 2 + wd.size * 2
                           + 2 * m_pad * cout * 2))

    h, res = pl.pallas_call(
        kernel,
        out_shape=(jax.ShapeDtypeStruct((m_pad, cout), jnp.bfloat16),
                   jax.ShapeDtypeStruct((m_pad, cout), jnp.bfloat16)),
        grid_spec=pltpu.PrefetchScalarGridSpec(
            num_scalar_prefetch=0, grid=grid,
            in_specs=[
                pl.BlockSpec((4, hp // 2, wp // 2, cin), xmap),
                pl.BlockSpec((9 * cin, cout), cmap),
                pl.BlockSpec((cin, cout), cmap),
                pl.BlockSpec((1, cout), cmap),
                pl.BlockSpec((1, cout), cmap),
                pl.BlockSpec((1, cout), cmap),
                pl.BlockSpec((1, cout), cmap),
            ],
            out_specs=(pl.BlockSpec((rb * owp, cout), omap),
                       pl.BlockSpec((rb * owp, cout), omap))),
        compiler_params=pltpu.CompilerParams(
            dimension_semantics=("parallel", "parallel"),
            vmem_limit_bytes=_VMEM_LIMIT),
        cost_estimate=cost,
    )(xph, w.astype(jnp.bfloat16), wd.astype(jnp.bfloat16), s2, b2, ds2, db2)

    h = h.reshape(n, oh, owp, cout)
    res = res.reshape(n, oh, owp, cout)
    if wpad:
        h = h[:, :, :ow, :]
        res = res[:, :, :ow, :]
    return h, res


# ------------------------------ stem plumbing --------------------------------

def im2col(x, kh, kw, stride, pad):
    """x: NHWC -> (N*OH*OW, KH*KW*C) patches, (kh, kw, c) ordering."""
    n, h, w, c = x.shape
    if pad:
        x = jnp.pad(x, ((0, 0), (pad, pad), (pad, pad), (0, 0)))
    oh = (h + 2 * pad - kh) // stride + 1
    ow = (w + 2 * pad - kw) // stride + 1
    cols = []
    for i in range(kh):
        for j in range(kw):
            cols.append(x[:, i:i + stride * oh:stride,
                          j:j + stride * ow:stride, :])
    p = jnp.stack(cols, axis=3)                       # (n, oh, ow, kh*kw, c)
    return p.reshape(n * oh * ow, kh * kw * c), (n, oh, ow)


# ------------------------------- parameters ----------------------------------

def _init_conv(key, cout, cin, kh, kw):
    fan_in = cin * kh * kw
    return (jax.random.normal(key, (cout, cin, kh, kw), jnp.float32)
            / jnp.sqrt(float(fan_in)))


def _fold_conv(w):
    """(Cout, Cin, KH, KW) -> (KH*KW*Cin, Cout) bf16, (kh, kw, cin) tap order."""
    cout, cin, kh, kw = w.shape
    return jnp.transpose(w, (2, 3, 1, 0)).reshape(kh * kw * cin,
                                                  cout).astype(jnp.bfloat16)


def _init_bn(key, c):
    """Folded (scale, bias) for inference-mode BatchNorm2d (f32)."""
    k1, k2, k3, k4 = jax.random.split(key, 4)
    gamma = 1.0 + 0.1 * jax.random.normal(k1, (c,), jnp.float32)
    beta = 0.1 * jax.random.normal(k2, (c,), jnp.float32)
    mean = 0.1 * jax.random.normal(k3, (c,), jnp.float32)
    var = 1.0 + 0.1 * jax.random.uniform(k4, (c,), jnp.float32)
    eps = 1e-5
    scale = gamma / jnp.sqrt(var + eps)
    bias = beta - mean * scale
    return scale, bias


def init_params(key, num_classes=18):
    keys = iter(jax.random.split(key, 64))
    params = {}

    params['base'] = {'w': _fold_conv(_init_conv(next(keys), 64, 3, 7, 7))}
    params['base']['s'], params['base']['b'] = _init_bn(next(keys), 64)

    blocks = []
    in_c = 64
    for out_c, stride in LAYER_CFG:
        blk = {
            'conv1_w': _fold_conv(_init_conv(next(keys), out_c, in_c, 3, 3)),
        }
        blk['bn1_s'], blk['bn1_b'] = _init_bn(next(keys), out_c)
        blk['conv2_w'] = _fold_conv(_init_conv(next(keys), out_c, out_c, 3, 3))
        blk['bn2_s'], blk['bn2_b'] = _init_bn(next(keys), out_c)
        if stride != 1 or in_c != out_c:
            blk['ds_w'] = _fold_conv(_init_conv(next(keys), out_c, in_c, 1, 1))
            blk['dsbn_s'], blk['dsbn_b'] = _init_bn(next(keys), out_c)
        blocks.append(blk)
        in_c = out_c
    params['blocks'] = blocks

    params['fc1'] = {
        'w': (0.01 * jax.random.normal(next(keys), (10240, 512),
                                       jnp.float32)).astype(jnp.bfloat16),
        'b': 0.01 * jax.random.normal(next(keys), (512,), jnp.float32)}
    params['fc2'] = {
        'w': (0.01 * jax.random.normal(next(keys), (512, num_classes),
                                       jnp.float32)).astype(jnp.bfloat16),
        'b': 0.01 * jax.random.normal(next(keys), (num_classes,), jnp.float32)}
    return params


# --------------------------------- forward -----------------------------------

def residual_block(x, p, in_c, out_c, stride):
    """Matches ResidualBlock.forward: conv-bn-relu-conv-bn (+skip) -> relu."""
    if stride == 1 and in_c == out_c:
        res = x
        h = conv3x3_bn(x, p['conv1_w'], p['bn1_s'], p['bn1_b'], relu=True)
    else:
        # conv1 + BN + ReLU and the 1x1 downsample + BN in one pallas_call.
        h, res = conv3x3_s2_ds_bn(x, p['conv1_w'], p['bn1_s'], p['bn1_b'],
                                  p['ds_w'], p['dsbn_s'], p['dsbn_b'])
    # conv2 + bn2 + residual add + final relu fused into one kernel epilogue.
    # TODO(synk): fuse conv1 and conv2 of a block into one pallas_call with h
    # held in VMEM scratch (needs halo handling across row blocks).
    return conv3x3_bn(h, p['conv2_w'], p['bn2_s'], p['bn2_b'], relu=True,
                      residual=res)


def resnet_forward(x_nchw, params):
    # NCHW (PyTorch convention) -> NHWC bf16 for the kernels.
    x = jnp.transpose(x_nchw, (0, 2, 3, 1)).astype(jnp.bfloat16)
    n = x.shape[0]

    # Stem: Conv(3->64, 7x7, s2, p3)+BN+ReLU.  3 input channels feed tap-GEMMs
    # too poorly, so keep a one-off XLA im2col (~6 MB) + fused Pallas GEMM.
    # TODO(synk): pad the stem's K=147 contraction to a lane-aligned size
    # without an extra HBM pass over the patches.
    patches, (_, oh, ow) = im2col(x, 7, 7, 2, 3)
    x = gemm_bn(patches, params['base']['w'], params['base']['s'],
                params['base']['b'], relu=True)
    x = x.reshape(n, oh, ow, 64)

    in_c = 64
    for blk, (out_c, stride) in zip(params['blocks'], LAYER_CFG):
        x = residual_block(x, blk, in_c, out_c, stride)
        in_c = out_c

    # gap = AvgPool2d(4): tiny reduction, kept as XLA glue (hot path is above).
    nb, h, w, c = x.shape
    assert h % 4 == 0 and w % 4 == 0, (h, w)
    x = x.reshape(nb, h // 4, 4, w // 4, 4, c).astype(jnp.float32).mean(
        axis=(2, 4))

    # out.view(N, -1) in PyTorch flattens NCHW -> (N, C*H*W); match that order.
    x = jnp.transpose(x, (0, 3, 1, 2)).reshape(nb, -1)        # (N, 10240)

    # fc1 then fc2 (no activation between them, matching the reference).
    x = gemm_bn(x, params['fc1']['w'], jnp.ones((512,), jnp.float32),
                params['fc1']['b'], relu=False)
    x = gemm_bn(x, params['fc2']['w'],
                jnp.ones((params['fc2']['w'].shape[1],), jnp.float32),
                params['fc2']['b'], relu=False, out_dtype=jnp.float32)
    return x


resnet_forward_jit = jax.jit(resnet_forward)


# ----------------------------------- main ------------------------------------

if __name__ == "__main__":
    key = jax.random.PRNGKey(0)
    kp, kx, k1, k2, k3, k4 = jax.random.split(key, 6)

    # Self-check 1: fused GEMM kernel (bf16 MXU, f32 epilogue) vs f32 reference.
    a_t = jax.random.normal(k1, (64, 96), jnp.float32)
    b_t = (0.1 * jax.random.normal(k2, (96, 48), jnp.float32)).astype(
        jnp.bfloat16)
    s_t = jnp.linspace(0.5, 1.5, 48, dtype=jnp.float32)
    c_t = jnp.linspace(-0.2, 0.2, 48, dtype=jnp.float32)
    got = gemm_bn(a_t, b_t, s_t, c_t, relu=True, out_dtype=jnp.float32)
    ref = jnp.maximum(
        jnp.dot(a_t.astype(jnp.bfloat16).astype(jnp.float32),
                b_t.astype(jnp.float32)) * s_t + c_t, 0.0)
    assert jnp.allclose(got, ref, rtol=2e-2, atol=2e-2)

    # Self-check 2: fused tap-GEMM 3x3 conv kernel vs im2col reference.
    xc = jax.random.normal(k3, (1, 16, 16, 64), jnp.float32).astype(
        jnp.bfloat16)
    wc = (jax.random.normal(k4, (576, 64), jnp.float32)
          / jnp.sqrt(576.0)).astype(jnp.bfloat16)
    sc = jnp.linspace(0.8, 1.2, 64, dtype=jnp.float32)
    bc = jnp.linspace(-0.1, 0.1, 64, dtype=jnp.float32)
    got_c = conv3x3_bn(xc, wc, sc, bc, relu=True).astype(jnp.float32)
    pc, _ = im2col(xc, 3, 3, 1, 1)
    ref_c = jnp.maximum(
        jnp.dot(pc.astype(jnp.float32), wc.astype(jnp.float32)) * sc + bc, 0.0)
    assert jnp.allclose(got_c.reshape(-1, 64), ref_c, rtol=2e-2, atol=2e-2)

    params = init_params(kp, num_classes=18)

    # Smallest input consistent with fc1's 10240 features: after the four
    # stride-2 stages and AvgPool2d(4), 256x320 -> 4x5 spatial, 512*4*5=10240.
    x = jax.random.normal(kx, (1, 3, 256, 320), jnp.float32)

    out = resnet_forward_jit(x, params)
    out = jax.block_until_ready(out)
    assert out.shape == (1, 18), out.shape
    assert bool(jnp.all(jnp.isfinite(out)))
    print("KERNEL_OK")
</pallas_src>

<mosaic_0001>
module attributes {stable_mosaic.version = 11 : i64} {
  func.func @_gemm_kernel(%arg0: i32, %arg1: i32, %arg2: memref<64x96xbf16, #tpu.memory_space<vmem>>, %arg3: memref<96x48xbf16, #tpu.memory_space<vmem>>, %arg4: memref<1x48xf32, #tpu.memory_space<vmem>>, %arg5: memref<1x48xf32, #tpu.memory_space<vmem>>, %arg6: memref<64x48xf32, #tpu.memory_space<vmem>>) attributes {dimension_semantics = [#tpu.dimension_semantics<parallel>, #tpu.dimension_semantics<parallel>], iteration_bounds = array<i64: 1, 1>, scalar_prefetch = 0 : i64, scratch_operands = 0 : i64, tpu.core_type = #tpu.core_type<tc>, window_params = [{transform_indices = @transform_0, window_bounds = array<i64: 64, 96>}, {transform_indices = @transform_1, window_bounds = array<i64: 96, 48>}, {transform_indices = @transform_2, window_bounds = array<i64: 1, 48>}, {transform_indices = @transform_3, window_bounds = array<i64: 1, 48>}, {transform_indices = @transform_4, window_bounds = array<i64: 64, 48>}]} {
    %c0 = arith.constant 0 : index
    %c0_0 = arith.constant 0 : index
    %0 = vector.load %arg2[%c0, %c0_0] : memref<64x96xbf16, #tpu.memory_space<vmem>>, vector<64x96xbf16>
    %c0_1 = arith.constant 0 : index
    %c0_2 = arith.constant 0 : index
    %1 = vector.load %arg3[%c0_1, %c0_2] : memref<96x48xbf16, #tpu.memory_space<vmem>>, vector<96x48xbf16>
    %cst = arith.constant dense<0.000000e+00> : vector<64x48xf32>
    %2 = tpu.matmul %0, %1, %cst {dimension_numbers = #tpu.dot_dimension_numbers<[1], [0], [0], [1], [0, 0, 1, 1], [], []>} : vector<64x96xbf16>, vector<96x48xbf16>, vector<64x48xf32> -> vector<64x48xf32>
    %c0_3 = arith.constant 0 : index
    %c0_4 = arith.constant 0 : index
    %3 = vector.load %arg4[%c0_3, %c0_4] : memref<1x48xf32, #tpu.memory_space<vmem>>, vector<1x48xf32>
    %4 = vector.broadcast %3 : vector<1x48xf32> to vector<64x48xf32>
    %5 = arith.mulf %2, %4 : vector<64x48xf32>
    %c0_5 = arith.constant 0 : index
    %c0_6 = arith.constant 0 : index
    %6 = vector.load %arg5[%c0_5, %c0_6] : memref<1x48xf32, #tpu.memory_space<vmem>>, vector<1x48xf32>
    %7 = vector.broadcast %6 : vector<1x48xf32> to vector<64x48xf32>
    %8 = arith.addf %5, %7 : vector<64x48xf32>
    %cst_7 = arith.constant 0.000000e+00 : f32
    %9 = vector.broadcast %cst_7 : f32 to vector<64x48xf32>
    %10 = arith.maximumf %8, %9 : vector<64x48xf32>
    %c0_8 = arith.constant 0 : index
    %c0_9 = arith.constant 0 : index
    %11 = vector.load %arg6[%c0_8, %c0_9] : memref<64x48xf32, #tpu.memory_space<vmem>>, vector<64x48xf32>
    tpu.vector_store %arg6[%c0_8, %c0_9], %10 {strides = array<i32>} : memref<64x48xf32, #tpu.memory_space<vmem>>, vector<64x48xf32>,
    return
  }
  func.func @transform_0(%arg0: i32, %arg1: i32) -> (i32, i32) {
    %c0_i32 = arith.constant 0 : i32
    %c0_i32_0 = arith.constant 0 : i32
    return %arg0, %c0_i32 : i32, i32
  }
  func.func @transform_1(%arg0: i32, %arg1: i32) -> (i32, i32) {
    %c0_i32 = arith.constant 0 : i32
    %c0_i32_0 = arith.constant 0 : i32
    return %c0_i32, %arg1 : i32, i32
  }
  func.func @transform_2(%arg0: i32, %arg1: i32) -> (i32, i32) {
    %c0_i32 = arith.constant 0 : i32
    %c0_i32_0 = arith.constant 0 : i32
    return %c0_i32, %arg1 : i32, i32
  }
  func.func @transform_3(%arg0: i32, %arg1: i32) -> (i32, i32) {
    %c0_i32 = arith.constant 0 : i32
    %c0_i32_0 = arith.constant 0 : i32
    return %c0_i32, %arg1 : i32, i32
  }
  func.func @transform_4(%arg0: i32, %arg1: i32) -> (i32, i32) {
    %c0_i32 = arith.constant 0 : i32
    return %arg0, %arg1 : i32, i32
  }
}

</mosaic_0001>

<bundles_post_ra>
// kernel: tpu_custom_call.1
= control target key start
LH: loop header
LB: loop body
LE: loop exit
PB: predicated region body
PF: predicated region fallthrough
CT: control target
= control target key end

     0   :  { %vm94_vm0 = vcmask 785408   ;;  %vm168_vm1 = vcmask 392192   ;;  %s348_s1 = inlined_call_operand.vmem [shape: bf16[96,48], index: 1, kind: input, shape index: {}]   ;;  %s349_s2 = inlined_call_operand.vmem [shape: f32[1,48], index: 2, kind: input, shape index: {}]   ;;  %s350_s3 = inlined_call_operand.vmem [shape: f32[1,48], index: 3, kind: input, shape index: {}]   ;;  %s351_s0 = inlined_call_operand.vmem [shape: bf16[64,96], index: 0, kind: input, shape index: {}]   ;;  %s352_s4 = inlined_call_operand.vmem [shape: f32[64,48], index: 4, kind: output, shape index: {}]  }
   0x1   :  { %v234_v0 = vld [vmem:[%s348_s1 + $0x28] sm:$0xff]  ;;  %v233_v1 = vld [vmem:[%s348_s1 + $0x20] sm:$0xff]  ;;  %v232_v2 = vld [vmem:[%s348_s1 + $0x18] sm:$0xff] }
   0x2   :  { %109 = vmatpush.bf16.msra.mxu0 %v234_v0  ;;  %235 = vmatpush.bf16.msra.mxu1 %v234_v0  ;;  %v231_v3 = vld [vmem:[%s348_s1 + $0x10] sm:$0xff]  ;;  %v230_v4 = vld [vmem:[%s348_s1 + $0x8] sm:$0xff]  ;;  %v229_v5 = vld [vmem:[%s348_s1] sm:$0xff] }
   0x3   :  { %236 = vmatpush.bf16.msra.mxu2 %v234_v0  ;;  %237 = vmatpush.bf16.msra.mxu3 %v234_v0  ;;  %v225_v6 = vld [vmem:[%s351_s0] sm:$0xff]  ;;  %v226_v7 = vld [vmem:[%s351_s0 + $0x8] sm:$0xff]  ;;  %v227_v8 = vld [vmem:[%s351_s0 + $0x10] sm:$0xff] }
   0x4   :  { %v228_v9 = vld [vmem:[%s351_s0 + $0x18] sm:$0xff]  ;;  %v253_v10 = vld [vmem:[%s349_s2] ss:$0 sm:$0xff] }
   0x5   :  { %v254_v11 = vld [vmem:[%s350_s3] ss:$0 sm:$0xff] }
   0x6   :  { %110 = vmatpush.bf16.msra.mxu0 %v233_v1  ;;  %238 = vmatpush.bf16.msra.mxu1 %v233_v1 }
   0x7   :  { %239 = vmatpush.bf16.msra.mxu2 %v233_v1  ;;  %240 = vmatpush.bf16.msra.mxu3 %v233_v1 }
   0xa   :  { %111 = vmatpush.bf16.msra.mxu0 %v232_v2  ;;  %241 = vmatpush.bf16.msra.mxu1 %v232_v2 }
   0xb   :  { %242 = vmatpush.bf16.msra.mxu2 %v232_v2  ;;  %243 = vmatpush.bf16.msra.mxu3 %v232_v2 }
   0xe   :  { %112 = vmatpush.bf16.msra.mxu0 %v231_v3  ;;  %244 = vmatpush.bf16.msra.mxu1 %v231_v3 }
   0xf   :  { %245 = vmatpush.bf16.msra.mxu2 %v231_v3  ;;  %246 = vmatpush.bf16.msra.mxu3 %v231_v3 }
  0x12   :  { %113 = vmatpush.bf16.msra.mxu0 %v230_v4  ;;  %247 = vmatpush.bf16.msra.mxu1 %v230_v4 }
  0x13   :  { %248 = vmatpush.bf16.msra.mxu2 %v230_v4  ;;  %249 = vmatpush.bf16.msra.mxu3 %v230_v4 }
  0x16   :  { %114 = vmatpush.bf16.msra.mxu0 %v229_v5  ;;  %250 = vmatpush.bf16.msra.mxu1 %v229_v5 }
  0x17   :  { %251 = vmatpush.bf16.msra.mxu2 %v229_v5  ;;  %252 = vmatpush.bf16.msra.mxu3 %v229_v5 }
  0x19   :  { %221 = vmatmul.msk.bf16.vlgmr.msra.gmra.mxu0 %vm94_vm0, %v225_v6  ;;  %222 = vmatmul.msk.bf16.vlgmr.msra.gmra.mxu1 %vm94_vm0, %v226_v7 }
  0x1a   :  { %223 = vmatmul.msk.bf16.vlgmr.msra.gmra.mxu2 %vm94_vm0, %v227_v8  ;;  %224 = vmatmul.msk.bf16.vlgmr.msra.gmra.mxu3 %vm94_vm0, %v228_v9 }
  0x96   :  { %v116_v12 = vpop.f32.mrf.mxu0  ;;  %v121_v13 = vpop.f32.mrf.mxu1 }
  0x97   :  { %v140_v14 = vmul.f32 %v253_v10, %v116_v12  ;;  %v142_v15 = vmul.f32 %v253_v10, %v121_v13 }
  0x99   :  { %v152_v16 = vadd.f32 %v254_v11, %v140_v14  ;;  %v154_v17 = vadd.f32 %v254_v11, %v142_v15 }
  0x9b   :  { %v160_v18 = vmax.f32 %v152_v16, 0.0  ;;  %v162_v19 = vmax.f32 %v154_v17, 0.0 }
  0x9d   :  { %169 = vst.msk [vmem:[%s352_s4] sm:$0xff] %vm168_vm1, %v160_v18  ;;  %v126_v20 = vpop.f32.mrf.mxu2  ;;  %v131_v21 = vpop.f32.mrf.mxu3 }
  0x9e   :  { %171 = vst.msk [vmem:[%s352_s4 + $0x10] sm:$0xff] %vm168_vm1, %v162_v19  ;;  %v144_v22 = vmul.f32 %v253_v10, %v126_v20  ;;  %v146_v23 = vmul.f32 %v253_v10, %v131_v21  ;;  %v118_v24 = vpop.f32.mrf.mxu0  ;;  %v123_v25 = vpop.f32.mrf.mxu1 }
  0x9f   :  { %v141_v26 = vmul.f32 %v253_v10, %v118_v24  ;;  %v143_v27 = vmul.f32 %v253_v10, %v123_v25 }
  0xa0   :  { %v156_v28 = vadd.f32 %v254_v11, %v144_v22  ;;  %v158_v29 = vadd.f32 %v254_v11, %v146_v23 }
  0xa1   :  { %v153_v30 = vadd.f32 %v254_v11, %v141_v26  ;;  %v155_v31 = vadd.f32 %v254_v11, %v143_v27 }
  0xa2   :  { %v164_v32 = vmax.f32 %v156_v28, 0.0  ;;  %v166_v33 = vmax.f32 %v158_v29, 0.0 }
  0xa3   :  { %v161_v34 = vmax.f32 %v153_v30, 0.0  ;;  %v163_v35 = vmax.f32 %v155_v31, 0.0 }
  0xa4   :  { %173 = vst.msk [vmem:[%s352_s4 + $0x20] sm:$0xff] %vm168_vm1, %v164_v32 }
  0xa5   :  { %175 = vst.msk [vmem:[%s352_s4 + $0x30] sm:$0xff] %vm168_vm1, %v166_v33  ;;  %v128_v36 = vpop.f32.mrf.mxu2  ;;  %v133_v37 = vpop.f32.mrf.mxu3 }
  0xa6   :  { %170 = vst.msk [vmem:[%s352_s4 + $0x8] sm:$0xff] %vm168_vm1, %v161_v34  ;;  %v145_v38 = vmul.f32 %v253_v10, %v128_v36  ;;  %v147_v39 = vmul.f32 %v253_v10, %v133_v37 }
  0xa7   :  { %172 = vst.msk [vmem:[%s352_s4 + $0x18] sm:$0xff] %vm168_vm1, %v163_v35 }
  0xa8   :  { %v157_v40 = vadd.f32 %v254_v11, %v145_v38  ;;  %v159_v41 = vadd.f32 %v254_v11, %v147_v39 }
  0xaa   :  { %v165_v42 = vmax.f32 %v157_v40, 0.0  ;;  %v167_v43 = vmax.f32 %v159_v41, 0.0 }
  0xac   :  { %174 = vst.msk [vmem:[%s352_s4 + $0x28] sm:$0xff] %vm168_vm1, %v165_v42 }
  0xad   :  { %176 = vst.msk [vmem:[%s352_s4 + $0x38] sm:$0xff] %vm168_vm1, %v167_v43 }

</bundles_post_ra>
